<compile_context>
chip_gen: v5e
topology: v5e:2x2
jax: 0.10.0
libtpu: 0.0.40
codegen_flags: <defaults>
</compile_context>

<pallas_src>
import functools

import jax
import jax.numpy as jnp
from jax import lax
from jax.experimental import pallas as pl
from jax.experimental.pallas import tpu as pltpu

LANE = 128                       # lane width (minor dim)
SUB = 8                          # f32 sublane tile height
ALIGN = SUB * LANE               # 1024: granularity of the (rows, 128) view
TILE_BYTES = 4 * 1024 * 1024     # ~4 MiB per input per pipeline buffer
VMEM_LIMIT = 32 * 1024 * 1024    # fits v5e/v6e/v7x; covers 2 x 2 x 4 MiB tiles


def _num_tensorcores():
    """2 TensorCores per chip on v7x, 1 on v5e/v6e (best effort detection)."""
    try:
        kind = jax.devices()[0].device_kind.lower()
    except Exception:
        return 1
    return 2 if ("v7" in kind or "7x" in kind) else 1


def _dice_kernel(rows, tm, spc, needs_mask, yp_ref, yt_ref, out_ref):
    # out_ref: (1, 3, SUB, LANE) f32 block, resident across the streaming axis.
    #   out[0,0]=partial sum(p*t), out[0,1]=partial sum(p), out[0,2]=partial sum(t)
    c = pl.program_id(0)   # core slab ("core_parallel" on v7x, size 1 otherwise)
    i = pl.program_id(1)   # streaming step ("arbitrary" / reduction axis)

    @pl.when(i == 0)
    def _():
        out_ref[...] = jnp.zeros_like(out_ref)

    yp = yp_ref[...].astype(jnp.float32)
    yt = yt_ref[...].astype(jnp.float32)

    def accum(p, t):
        def part(x):
            # (tm, LANE) -> (SUB, LANE): pure per-vreg adds (VPU only); the
            # expensive cross-lane reduce is deferred to the JAX epilogue.
            return jnp.sum(x.reshape(tm // SUB, SUB, LANE), axis=0)

        out_ref[0, 0, :, :] += part(p * t)
        out_ref[0, 1, :, :] += part(p)
        out_ref[0, 2, :, :] += part(t)

    if needs_mask:
        # Only the partial last tile (and clamped out-of-range blocks of the
        # second core) pay for the mask; full tiles take the cheap path.
        row0 = (c * spc + i) * tm
        is_full = row0 + tm <= rows

        @pl.when(is_full)
        def _():
            accum(yp, yt)

        @pl.when(jnp.logical_not(is_full))
        def _():
            gr = row0 + lax.broadcasted_iota(jnp.int32, (tm, LANE), 0)
            valid = gr < rows
            accum(jnp.where(valid, yp, 0.0), jnp.where(valid, yt, 0.0))
    else:
        accum(yp, yt)


def _partial_sums(yp2, yt2, rows, num_cores, tile_bytes):
    """Run the streaming kernel; returns (3,) = [sum(p*t), sum(p), sum(t)]."""
    itemsize = yp2.dtype.itemsize
    # Dtype-scaled tile: keep tm*LANE*itemsize ~ tile_bytes, rounded to a
    # multiple of 32 rows (covers bf16/int8 sublane packing); clamp to rows
    # (full-dim blocks are always legal).
    tm = max(32, (tile_bytes // (LANE * itemsize)) // 32 * 32)
    tm = min(tm, rows)
    nblocks = pl.cdiv(rows, tm)
    spc = pl.cdiv(nblocks, num_cores)              # streaming steps per core
    needs_mask = (num_cores * spc * tm) > rows

    if num_cores * spc == nblocks:
        def in_map(c, i):
            return (c * spc + i, 0)
    else:
        # Clamp out-of-range block indices; those steps are fully masked in
        # the kernel, so re-reading the last block is harmless.
        def in_map(c, i):
            return (jnp.minimum(c * spc + i, nblocks - 1), 0)

    kernel = functools.partial(_dice_kernel, rows, tm, spc, needs_mask)

    if num_cores > 1:
        dim_sem = (pltpu.CORE_PARALLEL, pltpu.ARBITRARY)   # engage both v7x TCs
    else:
        dim_sem = ("arbitrary", "arbitrary")

    partials = pl.pallas_call(
        kernel,
        out_shape=jax.ShapeDtypeStruct((num_cores, 3, SUB, LANE), jnp.float32),
        grid_spec=pltpu.PrefetchScalarGridSpec(
            num_scalar_prefetch=0,
            grid=(num_cores, spc),
            in_specs=[
                pl.BlockSpec((tm, LANE), in_map),
                pl.BlockSpec((tm, LANE), in_map),
            ],
            out_specs=pl.BlockSpec((1, 3, SUB, LANE), lambda c, i: (c, 0, 0, 0)),
        ),
        compiler_params=pltpu.CompilerParams(
            dimension_semantics=dim_sem,
            vmem_limit_bytes=VMEM_LIMIT,
        ),
        cost_estimate=pl.CostEstimate(
            flops=4 * rows * LANE,
            transcendentals=0,
            bytes_accessed=2 * rows * LANE * itemsize
            + num_cores * 3 * SUB * LANE * 4,
        ),
    )(yp2, yt2)

    return jnp.sum(partials, axis=(0, 2, 3))   # (3,)


def dice_loss(y_pred, y_true, smooth=1.0, tile_bytes=TILE_BYTES):
    assert y_pred.shape == y_true.shape
    yp = jnp.ravel(y_pred)
    yt = jnp.ravel(y_true)
    n = yp.shape[0]

    n_main = (n // ALIGN) * ALIGN   # 1024-aligned prefix handled by the kernel
    inter = jnp.float32(0.0)
    sum_p = jnp.float32(0.0)
    sum_t = jnp.float32(0.0)

    if n_main > 0:
        rows = n_main // LANE
        yp2 = yp[:n_main].reshape(rows, LANE)
        yt2 = yt[:n_main].reshape(rows, LANE)
        num_cores = _num_tensorcores()
        try:
            sums = _partial_sums(yp2, yt2, rows, num_cores, tile_bytes)
            if isinstance(sums, jax.Array):
                sums.block_until_ready()    # surface errors before fallback
        except Exception:
            if num_cores == 1:
                raise
            # Fall back to the single-core layout if core-parallel lowering
            # is unavailable on this chip/runtime.
            sums = _partial_sums(yp2, yt2, rows, 1, tile_bytes)
        inter, sum_p, sum_t = sums[0], sums[1], sums[2]

    if n_main < n:
        # <=1023-element tail reduced in plain JAX: avoids a whole-array pad
        # copy (which would roughly double the HBM traffic of this op).
        tp = yp[n_main:].astype(jnp.float32)
        tt = yt[n_main:].astype(jnp.float32)
        inter = inter + jnp.sum(tp * tt)
        sum_p = sum_p + jnp.sum(tp)
        sum_t = sum_t + jnp.sum(tt)

    score = (2.0 * inter + smooth) / (sum_p + sum_t + smooth)
    return 1.0 - score


def dice_loss_ref(y_pred, y_true, smooth=1.0):
    yp = jnp.ravel(y_pred).astype(jnp.float32)
    yt = jnp.ravel(y_true).astype(jnp.float32)
    inter = jnp.sum(yp * yt)
    score = (2.0 * inter + smooth) / (jnp.sum(yp) + jnp.sum(yt) + smooth)
    return 1.0 - score


if __name__ == "__main__":
    key = jax.random.PRNGKey(0)
    k1, k2, k3, k4, k5, k6 = jax.random.split(key, 6)

    # Primary test: NCHW segmentation-style inputs -> 2048 elems (1024-aligned).
    shape = (2, 4, 16, 16)
    y_pred = jax.nn.sigmoid(jax.random.normal(k1, shape, dtype=jnp.float32))
    y_true = (jax.random.uniform(k2, shape) > 0.5).astype(jnp.float32)
    out = jax.block_until_ready(dice_loss(y_pred, y_true, smooth=1.0))
    ref = jax.block_until_ready(dice_loss_ref(y_pred, y_true, smooth=1.0))
    assert jnp.allclose(out, ref, atol=1e-5, rtol=1e-5), (out, ref)

    # Unaligned size -> exercises the JAX tail path (no whole-array pad copy).
    shape2 = (3, 5, 9, 13)   # 1755 elems: 1024 prefix via kernel + 731 tail
    p2 = jax.nn.sigmoid(jax.random.normal(k3, shape2, dtype=jnp.float32))
    t2 = (jax.random.uniform(k4, shape2) > 0.5).astype(jnp.float32)
    out2 = jax.block_until_ready(dice_loss(p2, t2, smooth=1.0))
    ref2 = jax.block_until_ready(dice_loss_ref(p2, t2, smooth=1.0))
    assert jnp.allclose(out2, ref2, atol=1e-5, rtol=1e-5), (out2, ref2)

    # Tiny tile override -> exercises multi-block streaming + masked partial tile.
    shape3 = (5, 8, 128)     # 5120 elems = 40 rows of 128; tm=32 -> 2 blocks
    p3 = jax.nn.sigmoid(jax.random.normal(k5, shape3, dtype=jnp.float32))
    t3 = (jax.random.uniform(k6, shape3) > 0.5).astype(jnp.float32)
    out3 = jax.block_until_ready(dice_loss(p3, t3, smooth=1.0,
                                           tile_bytes=16 * LANE * 4))
    ref3 = jax.block_until_ready(dice_loss_ref(p3, t3, smooth=1.0))
    assert jnp.allclose(out3, ref3, atol=1e-5, rtol=1e-5), (out3, ref3)

    print("KERNEL_OK")
</pallas_src>

<mosaic_0001>
module attributes {stable_mosaic.version = 11 : i64} {
  func.func @_dice_kernel(%arg0: i32, %arg1: i32, %arg2: memref<16x128xf32, #tpu.memory_space<vmem>>, %arg3: memref<16x128xf32, #tpu.memory_space<vmem>>, %arg4: memref<1x3x8x128xf32, #tpu.memory_space<vmem>>) attributes {dimension_semantics = [#tpu.dimension_semantics<arbitrary>, #tpu.dimension_semantics<arbitrary>], iteration_bounds = array<i64: 1, 1>, scalar_prefetch = 0 : i64, scratch_operands = 0 : i64, tpu.core_type = #tpu.core_type<tc>, window_params = [{transform_indices = @transform_0, window_bounds = array<i64: 16, 128>}, {transform_indices = @transform_1, window_bounds = array<i64: 16, 128>}, {transform_indices = @transform_2, window_bounds = array<i64: 1, 3, 8, 128>}]} {
    %c0_i32 = arith.constant 0 : i32
    %0 = arith.cmpi eq, %arg1, %c0_i32 : i32
    %1 = arith.extui %0 : i1 to i32
    %c0_i32_0 = arith.constant 0 : i32
    %2 = arith.cmpi ne, %1, %c0_i32_0 : i32
    scf.if %2 {
      %cst_28 = arith.constant 0.000000e+00 : f32
      %30 = vector.broadcast %cst_28 : f32 to vector<1x3x8x128xf32>
      %c0_29 = arith.constant 0 : index
      %c0_30 = arith.constant 0 : index
      %c0_31 = arith.constant 0 : index
      %c0_32 = arith.constant 0 : index
      %31 = vector.load %arg4[%c0_29, %c0_30, %c0_31, %c0_32] : memref<1x3x8x128xf32, #tpu.memory_space<vmem>>, vector<1x3x8x128xf32>
      tpu.vector_store %arg4[%c0_29, %c0_30, %c0_31, %c0_32], %30 {strides = array<i32>} : memref<1x3x8x128xf32, #tpu.memory_space<vmem>>, vector<1x3x8x128xf32>,
    } else {
    }
    %c0 = arith.constant 0 : index
    %c0_1 = arith.constant 0 : index
    %3 = vector.load %arg2[%c0, %c0_1] : memref<16x128xf32, #tpu.memory_space<vmem>>, vector<16x128xf32>
    %c0_2 = arith.constant 0 : index
    %c0_3 = arith.constant 0 : index
    %4 = vector.load %arg3[%c0_2, %c0_3] : memref<16x128xf32, #tpu.memory_space<vmem>>, vector<16x128xf32>
    %c0_4 = arith.constant 0 : index
    %c0_5 = arith.constant 0 : index
    %c0_6 = arith.constant 0 : index
    %c0_7 = arith.constant 0 : index
    %5 = vector.load %arg4[%c0_4, %c0_5, %c0_6, %c0_7] : memref<1x3x8x128xf32, #tpu.memory_space<vmem>>, vector<1x1x8x128xf32>
    %6 = vector.shape_cast %5 : vector<1x1x8x128xf32> to vector<8x128xf32>
    %7 = arith.mulf %3, %4 : vector<16x128xf32>
    %8 = vector.shape_cast %7 : vector<16x128xf32> to vector<2x8x128xf32>
    %cst = arith.constant dense<0.000000e+00> : vector<8x128xf32>
    %9 = vector.multi_reduction <add>, %8, %cst [0] : vector<2x8x128xf32> to vector<8x128xf32>
    %10 = arith.addf %6, %9 : vector<8x128xf32>
    %c0_8 = arith.constant 0 : index
    %c0_9 = arith.constant 0 : index
    %c0_10 = arith.constant 0 : index
    %c0_11 = arith.constant 0 : index
    %11 = vector.load %arg4[%c0_8, %c0_9, %c0_10, %c0_11] : memref<1x3x8x128xf32, #tpu.memory_space<vmem>>, vector<1x1x8x128xf32>
    %12 = vector.shape_cast %11 : vector<1x1x8x128xf32> to vector<8x128xf32>
    %13 = vector.shape_cast %10 : vector<8x128xf32> to vector<1x1x8x128xf32>
    tpu.vector_store %arg4[%c0_8, %c0_9, %c0_10, %c0_11], %13 {strides = array<i32>} : memref<1x3x8x128xf32, #tpu.memory_space<vmem>>, vector<1x1x8x128xf32>,
    %c0_12 = arith.constant 0 : index
    %c1 = arith.constant 1 : index
    %c0_13 = arith.constant 0 : index
    %c0_14 = arith.constant 0 : index
    %14 = vector.load %arg4[%c0_12, %c1, %c0_13, %c0_14] : memref<1x3x8x128xf32, #tpu.memory_space<vmem>>, vector<1x1x8x128xf32>
    %15 = vector.shape_cast %14 : vector<1x1x8x128xf32> to vector<8x128xf32>
    %16 = vector.shape_cast %3 : vector<16x128xf32> to vector<2x8x128xf32>
    %cst_15 = arith.constant dense<0.000000e+00> : vector<8x128xf32>
    %17 = vector.multi_reduction <add>, %16, %cst_15 [0] : vector<2x8x128xf32> to vector<8x128xf32>
    %18 = arith.addf %15, %17 : vector<8x128xf32>
    %c0_16 = arith.constant 0 : index
    %c1_17 = arith.constant 1 : index
    %c0_18 = arith.constant 0 : index
    %c0_19 = arith.constant 0 : index
    %19 = vector.load %arg4[%c0_16, %c1_17, %c0_18, %c0_19] : memref<1x3x8x128xf32, #tpu.memory_space<vmem>>, vector<1x1x8x128xf32>
    %20 = vector.shape_cast %19 : vector<1x1x8x128xf32> to vector<8x128xf32>
    %21 = vector.shape_cast %18 : vector<8x128xf32> to vector<1x1x8x128xf32>
    tpu.vector_store %arg4[%c0_16, %c1_17, %c0_18, %c0_19], %21 {strides = array<i32>} : memref<1x3x8x128xf32, #tpu.memory_space<vmem>>, vector<1x1x8x128xf32>,
    %c0_20 = arith.constant 0 : index
    %c2 = arith.constant 2 : index
    %c0_21 = arith.constant 0 : index
    %c0_22 = arith.constant 0 : index
    %22 = vector.load %arg4[%c0_20, %c2, %c0_21, %c0_22] : memref<1x3x8x128xf32, #tpu.memory_space<vmem>>, vector<1x1x8x128xf32>
    %23 = vector.shape_cast %22 : vector<1x1x8x128xf32> to vector<8x128xf32>
    %24 = vector.shape_cast %4 : vector<16x128xf32> to vector<2x8x128xf32>
    %cst_23 = arith.constant dense<0.000000e+00> : vector<8x128xf32>
    %25 = vector.multi_reduction <add>, %24, %cst_23 [0] : vector<2x8x128xf32> to vector<8x128xf32>
    %26 = arith.addf %23, %25 : vector<8x128xf32>
    %c0_24 = arith.constant 0 : index
    %c2_25 = arith.constant 2 : index
    %c0_26 = arith.constant 0 : index
    %c0_27 = arith.constant 0 : index
    %27 = vector.load %arg4[%c0_24, %c2_25, %c0_26, %c0_27] : memref<1x3x8x128xf32, #tpu.memory_space<vmem>>, vector<1x1x8x128xf32>
    %28 = vector.shape_cast %27 : vector<1x1x8x128xf32> to vector<8x128xf32>
    %29 = vector.shape_cast %26 : vector<8x128xf32> to vector<1x1x8x128xf32>
    tpu.vector_store %arg4[%c0_24, %c2_25, %c0_26, %c0_27], %29 {strides = array<i32>} : memref<1x3x8x128xf32, #tpu.memory_space<vmem>>, vector<1x1x8x128xf32>,
    return
  }
  func.func @transform_0(%arg0: i32, %arg1: i32) -> (i32, i32) {
    %c1_i32 = arith.constant 1 : i32
    %0 = arith.muli %arg0, %c1_i32 : i32
    %1 = arith.addi %0, %arg1 : i32
    %c0_i32 = arith.constant 0 : i32
    %c0_i32_0 = arith.constant 0 : i32
    return %1, %c0_i32 : i32, i32
  }
  func.func @transform_1(%arg0: i32, %arg1: i32) -> (i32, i32) {
    %c1_i32 = arith.constant 1 : i32
    %0 = arith.muli %arg0, %c1_i32 : i32
    %1 = arith.addi %0, %arg1 : i32
    %c0_i32 = arith.constant 0 : i32
    %c0_i32_0 = arith.constant 0 : i32
    return %1, %c0_i32 : i32, i32
  }
  func.func @transform_2(%arg0: i32, %arg1: i32) -> (i32, i32, i32, i32) {
    %c0_i32 = arith.constant 0 : i32
    %c0_i32_0 = arith.constant 0 : i32
    %c0_i32_1 = arith.constant 0 : i32
    %c0_i32_2 = arith.constant 0 : i32
    return %arg0, %c0_i32, %c0_i32_0, %c0_i32_1 : i32, i32, i32, i32
  }
}

</mosaic_0001>

<bundles_post_ra>
// kernel: tpu_custom_call.1
= control target key start
LH: loop header
LB: loop body
LE: loop exit
PB: predicated region body
PF: predicated region fallthrough
CT: control target
= control target key end

     0   :  { %7 = vsyncpa [#allocation3], 0  ;;  %s225_s0 = inlined_call_operand.hbm [shape: f32[16,128], index: 0, kind: input, shape index: {}]   ;;  %s226_s1 = inlined_call_operand.hbm [shape: f32[16,128], index: 1, kind: input, shape index: {}]   ;;  %s227_s2 = inlined_call_operand.hbm [shape: f32[1,3,8,128], index: 2, kind: output, shape index: {}]  }
   0x1   :  { %8 = vsyncpa [#allocation6], 0 }
   0x2   :  { %9 = vsyncpa [#allocation4], 0  ;;  %s18_s11 = sshll.u32 %s225_s0, 4  ;;  %s187_s12 = smov [#allocation2]   ;;  %s19_s11 = int_to_ptr.hbm [resolvable:$true] %s18_s11 }
   0x3   :  { %s20_s13 = sshll.u32 %s187_s12, 4  ;;  %s35_s16 = sshll.u32 %s226_s1, 4  ;;  %s21_s13 = int_to_ptr.vmem [resolvable:$true] %s20_s13  ;;  %s36_s16 = int_to_ptr.hbm [resolvable:$true] %s35_s16 }
   0x4   :  { %s188_s17 = smov 128   ;;  %s189_s18 = smov 8  }
   0x5   :  { %26 = dma.hbm_to_vmem [thread:$0]  %s19_s11, 256, %s21_s13, [#allocation3], %s188_s17, %s188_s17, %s189_s18  }
   0x6   :  { %s190_s19 = smov [#allocation5]  }
   0x7   :  { %s37_s20 = sshll.u32 %s190_s19, 4  ;;  %s38_s20 = int_to_ptr.vmem [resolvable:$true] %s37_s20 }
   0x8   :  { %43 = dma.hbm_to_vmem [thread:$0]  %s36_s16, 256, %s38_s20, [#allocation6], %s188_s17, %s188_s17, %s189_s18  }
   0x9   :  { %181 = dma.done.wait [#allocation3], 256  }
   0xa   :  { %182 = vsyncadd [#allocation3], 4294967040 }
   0xb   :  { %183 = dma.done.wait [#allocation6], 256  }
   0xc   :  { %184 = vsyncadd [#allocation6], 4294967040  ;;  %v63_v0 = vld [vmem:[#allocation2] sm:$0xff]  ;;  %v64_v1 = vld [vmem:[#allocation2 + $0x8] sm:$0xff]  ;;  %s191_s0 = smov [#allocation7]   ;;  %s89_s23 = sshll.u32 %s227_s2, 4  ;;  %s90_s23 = int_to_ptr.hbm [resolvable:$true] %s89_s23 }
   0xd   :  { %v65_v2 = vld [vmem:[#allocation5] sm:$0xff]  ;;  %v66_v3 = vld [vmem:[#allocation5 + $0x8] sm:$0xff]  ;;  %v75_v5 = vadd.f32 %v64_v1, %v63_v0  ;;  %s87_s1 = sshll.u32 %s191_s0, 4  ;;  %s88_s1 = int_to_ptr.vmem [resolvable:$true] %s87_s1 }
   0xe   :  { %v68_v4 = vmul.f32 %v65_v2, %v63_v0  ;;  %v69_v6 = vmul.f32 %v66_v3, %v64_v1  ;;  %v80_v7 = vadd.f32 %v66_v3, %v65_v2 }
   0xf   :  { %77 = vst [vmem:[#allocation7 + $0x8] sm:$0xff] %v75_v5 }
  0x10   :  { %v70_v8 = vadd.f32 %v69_v6, %v68_v4  ;;  %82 = vst [vmem:[#allocation7 + $0x10] sm:$0xff] %v80_v7 }
  0x12   :  { %72 = vst [vmem:[#allocation7] sm:$0xff] %v70_v8 }
  0x13   :  { %95 = dma.vmem_to_hbm [thread:$0]  %s88_s1, 384, %s90_s23, [#allocation4], %s188_s17, %s188_s17, %s189_s18  }
  0x14   :  { %185 = dma.done.wait [#allocation4], 384  }
  0x15   :  { %186 = vsyncadd [#allocation4], 4294966912 }
  0x16   :  { %100 = vsyncpa [#allocation3], 1 }
  0x17   :  { %101 = vsyncpa [#allocation6], 1 }
  0x18   :  { %102 = vsyncpa [#allocation4], 1 }

</bundles_post_ra>
